<compile_context>
chip_gen: v7x
topology: tpu7x:2x2x1
jax: 0.10.0
libtpu: 0.0.40
codegen_flags: <defaults>
</compile_context>

<pallas_src>
import functools

import jax
import jax.numpy as jnp
from jax import lax
from jax.experimental import pallas as pl
from jax.experimental.pallas import tpu as pltpu


def _round_up(n, m):
    return ((n + m - 1) // m) * m


def _vmem_capacity_bytes():
    """Physical VMEM of the current chip (falls back to the v7x per-TC minimum)."""
    try:
        info = pltpu.get_tpu_info()
        cap = getattr(info, "vmem_capacity_bytes", None)
        if cap:
            return int(cap)
    except Exception:
        pass
    return 64 * 1024 * 1024


# --------------------------------------------------------------------------------------
# Kernel
# --------------------------------------------------------------------------------------
def _mmilb_kernel(x_ref, y_ref, w1_ref, b1_ref, w2p_ref, b2_ref,
                  slab_ref, lld_ref, *, y_size, p_size, n_out, mxu_dtype):
    xt = x_ref[...]                     # (TB, x)  already in mxu_dtype (wrapper casts)
    yt = y_ref[...]                     # (TB, y)  f32 (needed in f32 for the epilogue)

    # ---- stage 1: fused mu/logvar first layer, one MXU pass, f32 accumulation ----
    h1 = jnp.dot(xt, w1_ref[...], preferred_element_type=jnp.float32) + b1_ref[...]
    h1 = jnp.maximum(h1, 0.0)           # (TB, 2y) = [h_mu | h_lv]

    # ---- stage 2: single K-stacked MXU pass:  [h_mu | h_lv | y] @ [[W2m 0 0],
    #                                                                [0 W2v 0],
    #                                                                [0 0  Wp]] + b ----
    h1y = jnp.concatenate([h1.astype(mxu_dtype), yt.astype(mxu_dtype)], axis=-1)
    out2 = jnp.dot(h1y, w2p_ref[...], preferred_element_type=jnp.float32) + b2_ref[...]

    # ---- elementwise epilogue in f32 (v5e VPU/EUP have no bf16 path) ----
    mu = out2[:, 0:y_size]
    logvar = out2[:, y_size:2 * y_size]
    diff = mu - yt
    positive = -(diff * diff) * 0.5 * jnp.exp(-logvar)
    lld_ref[...] = jnp.sum(positive, axis=-1, keepdims=True)       # (TB, 1) per-row lld

    # tanh only on the lane-aligned column range covering the projection columns.
    proj_lo = 2 * y_size
    proj_hi = 2 * y_size + p_size
    lo_al = (proj_lo // 128) * 128
    hi_al = min(n_out, _round_up(proj_hi, 128))
    if lo_al > 0:                                                   # mu/logvar columns
        slab_ref[:, 0:lo_al] = out2[:, 0:lo_al]
    seg = out2[:, lo_al:hi_al]
    col = lax.broadcasted_iota(jnp.int32, seg.shape, 1) + lo_al
    slab_ref[:, lo_al:hi_al] = jnp.where((col >= proj_lo) & (col < proj_hi),
                                         jnp.tanh(seg), seg)
    if hi_al < n_out:                                               # zero padding columns
        slab_ref[:, hi_al:n_out] = out2[:, hi_al:n_out]


# --------------------------------------------------------------------------------------
# Wrappers
# --------------------------------------------------------------------------------------
def pack_mmilb_params(params, mxu_dtype=jnp.float32):
    """Pack MMILB weights ONCE (call at init, not per forward).

    Layout:
      w1  : (x, 2y)          = [W1m | W1v]                 (mxu_dtype)
      b1  : (1, 2y)          = [b1m | b1v]                 (f32)
      w2p : (3y, n_out)      = K-stacked block-diag W2m/W2v plus Wp  (mxu_dtype)
      b2  : (1, n_out)       = [b2m | b2v | bp | 0]        (f32)
    n_out = round_up(2y + y//4, 128) so the output slab is lane-dense.
    """
    x_size, y_size = params["w1m"].shape
    p_size = params["wp"].shape[1]
    h1_w = 2 * y_size
    n_out = _round_up(2 * y_size + p_size, 128)

    w1 = jnp.concatenate([params["w1m"], params["w1v"]], axis=1).astype(mxu_dtype)
    b1 = jnp.concatenate([params["b1m"], params["b1v"]], axis=1).astype(jnp.float32)

    w2p = jnp.zeros((h1_w + y_size, n_out), jnp.float32)
    w2p = w2p.at[0:y_size, 0:y_size].set(params["w2m"])
    w2p = w2p.at[y_size:2 * y_size, y_size:2 * y_size].set(params["w2v"])
    w2p = w2p.at[2 * y_size:3 * y_size, 2 * y_size:2 * y_size + p_size].set(params["wp"])
    w2p = w2p.astype(mxu_dtype)

    b2 = jnp.zeros((1, n_out), jnp.float32)
    b2 = b2.at[:, 0:y_size].set(params["b2m"])
    b2 = b2.at[:, y_size:2 * y_size].set(params["b2v"])
    b2 = b2.at[:, 2 * y_size:2 * y_size + p_size].set(params["bp"])

    return dict(w1=w1, b1=b1, w2p=w2p, b2=b2,
                x_size=x_size, y_size=y_size, p_size=p_size, n_out=n_out)


def mmilb_forward_slab(x, y, packed, *, batch_tile=1024):
    """Fused MMILB forward (labels=None, mem=None path).

    Returns (lld, slab) where slab[:, :y]=mu, slab[:, y:2y]=logvar,
    slab[:, 2y:2y+p]=tanh projection, remaining columns are zero padding
    (rows beyond the original batch are padding too). Downstream consumers should
    read the slab directly rather than slicing it back out (saves HBM copies).
    """
    bs = x.shape[0]
    x_size, y_size = packed["x_size"], packed["y_size"]
    p_size, n_out = packed["p_size"], packed["n_out"]
    h1_w = 2 * y_size
    mxu_dtype = packed["w1"].dtype
    mxu_sz = jnp.dtype(mxu_dtype).itemsize

    # bf16 operands pack two rows per sublane -> batch tile must be a multiple of 16.
    sub = 16 if mxu_sz < 4 else 8
    # Aim for >=2 grid steps (when bs allows) so the "parallel" batch axis shards over
    # both v7x TensorCores; harmless on single-TC v5e/v6e.
    tb = min(int(batch_tile), max(sub, _round_up(-(-bs // 2), sub)))

    weight_bytes = (x_size * h1_w * mxu_sz + h1_w * 4
                    + (h1_w + y_size) * n_out * mxu_sz + n_out * 4)

    def _vmem_need(t):
        tile = t * (x_size * mxu_sz + (y_size + n_out + 1) * 4)
        return 2 * tile + 2 * weight_bytes          # double-buffered tiles + weights

    cap = _vmem_capacity_bytes()                    # 64 MiB on v7x, 128 MiB on v5e/v6e
    budget = int(0.9 * cap)
    while tb > sub and _vmem_need(tb) > budget:
        tb = max(sub, _round_up(tb // 2, sub))

    bs_pad = _round_up(bs, tb)
    xk = x.astype(mxu_dtype)                        # cast once in the wrapper, not per step
    yk = y.astype(jnp.float32)                      # y stays f32 (f32 epilogue)
    if bs_pad != bs:
        xk = jnp.pad(xk, ((0, bs_pad - bs), (0, 0)))
        yk = jnp.pad(yk, ((0, bs_pad - bs), (0, 0)))
    grid = (bs_pad // tb,)

    kernel = functools.partial(_mmilb_kernel, y_size=y_size, p_size=p_size,
                               n_out=n_out, mxu_dtype=mxu_dtype)

    vmem_limit = int(min(cap, max(4 << 20, _vmem_need(tb) + (2 << 20))))
    lo_al = (2 * y_size // 128) * 128
    hi_al = min(n_out, _round_up(2 * y_size + p_size, 128))
    cost = pl.CostEstimate(
        flops=2 * bs_pad * (x_size * h1_w + (h1_w + y_size) * n_out),
        transcendentals=bs_pad * (y_size + (hi_al - lo_al)),
        bytes_accessed=bs_pad * (x_size * mxu_sz + (y_size + n_out + 1) * 4) + weight_bytes,
    )

    slab, lld_rows = pl.pallas_call(
        kernel,
        out_shape=(jax.ShapeDtypeStruct((bs_pad, n_out), jnp.float32),
                   jax.ShapeDtypeStruct((bs_pad, 1), jnp.float32)),
        grid_spec=pltpu.PrefetchScalarGridSpec(
            num_scalar_prefetch=0,
            grid=grid,
            in_specs=[
                pl.BlockSpec((tb, x_size), lambda i: (i, 0)),            # x tile (mxu dtype)
                pl.BlockSpec((tb, y_size), lambda i: (i, 0)),            # y tile (f32)
                pl.BlockSpec((x_size, h1_w), lambda i: (0, 0)),          # fused W1 (resident)
                pl.BlockSpec((1, h1_w), lambda i: (0, 0)),               # fused b1
                pl.BlockSpec((h1_w + y_size, n_out), lambda i: (0, 0)),  # K-stacked W2|Wp
                pl.BlockSpec((1, n_out), lambda i: (0, 0)),              # fused b2|bp
            ],
            out_specs=[
                pl.BlockSpec((tb, n_out), lambda i: (i, 0)),             # [mu|logvar|yproj|0]
                pl.BlockSpec((tb, 1), lambda i: (i, 0)),                 # per-row lld partial
            ],
        ),
        compiler_params=pltpu.CompilerParams(
            dimension_semantics=("parallel",),
            vmem_limit_bytes=vmem_limit,
        ),
        cost_estimate=cost,
    )(xk, yk, packed["w1"], packed["b1"], packed["w2p"], packed["b2"])

    lld = jnp.sum(lld_rows[:bs, 0]) * (1.0 / bs)     # dense (bs,1) read, no strided gather
    return lld, slab


def mmilb_forward(x, y, packed, *, batch_tile=1024):
    """Convenience wrapper returning (lld, mu, logvar, y_proj).
    Note: each slice is an extra HBM copy; prefer mmilb_forward_slab for fused pipelines."""
    lld, slab = mmilb_forward_slab(x, y, packed, batch_tile=batch_tile)
    bs = x.shape[0]
    y_size, p_size = packed["y_size"], packed["p_size"]
    mu = slab[:bs, 0:y_size]
    logvar = slab[:bs, y_size:2 * y_size]
    yproj = slab[:bs, 2 * y_size:2 * y_size + p_size]
    return lld, mu, logvar, yproj


# --------------------------------------------------------------------------------------
# Init + pure-JAX reference + self-test
# --------------------------------------------------------------------------------------
def init_params(key, x_size, y_size):
    """Deterministic init mimicking PyTorch nn.Linear (uniform +-1/sqrt(fan_in)).
    Weights stored as (in, out); biases stored as (1, out)."""
    def linear(k, fan_in, fan_out):
        kw, kb = jax.random.split(k)
        bound = 1.0 / jnp.sqrt(fan_in)
        w = jax.random.uniform(kw, (fan_in, fan_out), jnp.float32, -bound, bound)
        b = jax.random.uniform(kb, (1, fan_out), jnp.float32, -bound, bound)
        return w, b

    keys = jax.random.split(key, 5)
    w1m, b1m = linear(keys[0], x_size, y_size)
    w2m, b2m = linear(keys[1], y_size, y_size)
    w1v, b1v = linear(keys[2], x_size, y_size)
    w2v, b2v = linear(keys[3], y_size, y_size)
    wp, bp = linear(keys[4], y_size, y_size // 4)
    return dict(w1m=w1m, b1m=b1m, w2m=w2m, b2m=b2m,
                w1v=w1v, b1v=b1v, w2v=w2v, b2v=b2v,
                wp=wp, bp=bp)


def mmilb_reference(x, y, p):
    h_mu = jnp.maximum(x @ p["w1m"] + p["b1m"], 0.0)
    mu = h_mu @ p["w2m"] + p["b2m"]
    h_lv = jnp.maximum(x @ p["w1v"] + p["b1v"], 0.0)
    logvar = h_lv @ p["w2v"] + p["b2v"]
    positive = -(mu - y) ** 2 / 2.0 / jnp.exp(logvar)
    lld = jnp.mean(jnp.sum(positive, axis=-1))
    yproj = jnp.tanh(y @ p["wp"] + p["bp"])
    return lld, mu, logvar, yproj


if __name__ == "__main__":
    bs, x_size, y_size = 8, 32, 32

    key = jax.random.PRNGKey(0)
    kx, ky, kp = jax.random.split(key, 3)
    x = jax.random.normal(kx, (bs, x_size), jnp.float32)
    y = jax.random.normal(ky, (bs, y_size), jnp.float32)
    params = init_params(kp, x_size, y_size)

    lld_r, mu_r, logvar_r, yproj_r = mmilb_reference(x, y, params)

    # f32 MXU path — exact check against the plain-JAX reference.
    packed_f32 = pack_mmilb_params(params, mxu_dtype=jnp.float32)
    out = mmilb_forward(x, y, packed_f32)
    jax.block_until_ready(out)
    lld, mu, logvar, yproj = out
    assert jnp.allclose(lld, lld_r, atol=1e-4, rtol=1e-4)
    assert jnp.allclose(mu, mu_r, atol=1e-4, rtol=1e-4)
    assert jnp.allclose(logvar, logvar_r, atol=1e-4, rtol=1e-4)
    assert jnp.allclose(yproj, yproj_r, atol=1e-4, rtol=1e-4)

    # bf16 MXU operands (fast path on all generations, biggest win on v5e);
    # f32 accumulation and f32 elementwise epilogue — loose check.
    packed_bf16 = pack_mmilb_params(params, mxu_dtype=jnp.bfloat16)
    out_b = mmilb_forward(x, y, packed_bf16)
    jax.block_until_ready(out_b)
    lld_b, mu_b, logvar_b, yproj_b = out_b
    assert jnp.allclose(lld_b, lld_r, atol=5e-2, rtol=5e-2)
    assert jnp.allclose(mu_b, mu_r, atol=5e-2, rtol=5e-2)
    assert jnp.allclose(logvar_b, logvar_r, atol=5e-2, rtol=5e-2)
    assert jnp.allclose(yproj_b, yproj_r, atol=5e-2, rtol=5e-2)

    print("KERNEL_OK")
</pallas_src>

<mosaic_0001>
module attributes {stable_mosaic.version = 11 : i64} {
  func.func @_mmilb_kernel(%arg0: i32, %arg1: memref<8x32xf32, #tpu.memory_space<vmem>>, %arg2: memref<8x32xf32, #tpu.memory_space<vmem>>, %arg3: memref<32x64xf32, #tpu.memory_space<vmem>>, %arg4: memref<1x64xf32, #tpu.memory_space<vmem>>, %arg5: memref<96x128xf32, #tpu.memory_space<vmem>>, %arg6: memref<1x128xf32, #tpu.memory_space<vmem>>, %arg7: memref<8x128xf32, #tpu.memory_space<vmem>>, %arg8: memref<8x1xf32, #tpu.memory_space<vmem>>) attributes {dimension_semantics = [#tpu.dimension_semantics<parallel>], iteration_bounds = array<i64: 1>, scalar_prefetch = 0 : i64, scratch_operands = 0 : i64, tpu.core_type = #tpu.core_type<tc>, window_params = [{transform_indices = @transform_0, window_bounds = array<i64: 8, 32>}, {transform_indices = @transform_1, window_bounds = array<i64: 8, 32>}, {pipeline_mode = #tpu.pipeline_mode<synchronous>, transform_indices = @transform_2, window_bounds = array<i64: 32, 64>}, {pipeline_mode = #tpu.pipeline_mode<synchronous>, transform_indices = @transform_3, window_bounds = array<i64: 1, 64>}, {pipeline_mode = #tpu.pipeline_mode<synchronous>, transform_indices = @transform_4, window_bounds = array<i64: 96, 128>}, {pipeline_mode = #tpu.pipeline_mode<synchronous>, transform_indices = @transform_5, window_bounds = array<i64: 1, 128>}, {transform_indices = @transform_6, window_bounds = array<i64: 8, 128>}, {transform_indices = @transform_7, window_bounds = array<i64: 8, 1>}]} {
    %c0 = arith.constant 0 : index
    %c0_0 = arith.constant 0 : index
    %0 = vector.load %arg1[%c0, %c0_0] : memref<8x32xf32, #tpu.memory_space<vmem>>, vector<8x32xf32>
    %c0_1 = arith.constant 0 : index
    %c0_2 = arith.constant 0 : index
    %1 = vector.load %arg2[%c0_1, %c0_2] : memref<8x32xf32, #tpu.memory_space<vmem>>, vector<8x32xf32>
    %c0_3 = arith.constant 0 : index
    %c0_4 = arith.constant 0 : index
    %2 = vector.load %arg3[%c0_3, %c0_4] : memref<32x64xf32, #tpu.memory_space<vmem>>, vector<32x64xf32>
    %cst = arith.constant dense<0.000000e+00> : vector<8x64xf32>
    %3 = tpu.matmul %0, %2, %cst {dimension_numbers = #tpu.dot_dimension_numbers<[1], [0], [0], [1], [0, 0, 1, 1], [], []>} : vector<8x32xf32>, vector<32x64xf32>, vector<8x64xf32> -> vector<8x64xf32>
    %c0_5 = arith.constant 0 : index
    %c0_6 = arith.constant 0 : index
    %4 = vector.load %arg4[%c0_5, %c0_6] : memref<1x64xf32, #tpu.memory_space<vmem>>, vector<1x64xf32>
    %5 = vector.broadcast %4 : vector<1x64xf32> to vector<8x64xf32>
    %6 = arith.addf %3, %5 : vector<8x64xf32>
    %cst_7 = arith.constant 0.000000e+00 : f32
    %7 = vector.broadcast %cst_7 : f32 to vector<8x64xf32>
    %8 = arith.maximumf %6, %7 : vector<8x64xf32>
    %9 = tpu.concatenate %8, %1 in 1 : vector<8x64xf32>, vector<8x32xf32> -> vector<8x96xf32>
    %c0_8 = arith.constant 0 : index
    %c0_9 = arith.constant 0 : index
    %10 = vector.load %arg5[%c0_8, %c0_9] : memref<96x128xf32, #tpu.memory_space<vmem>>, vector<96x128xf32>
    %cst_10 = arith.constant dense<0.000000e+00> : vector<8x128xf32>
    %11 = tpu.matmul %9, %10, %cst_10 {dimension_numbers = #tpu.dot_dimension_numbers<[1], [0], [0], [1], [0, 0, 1, 1], [], []>} : vector<8x96xf32>, vector<96x128xf32>, vector<8x128xf32> -> vector<8x128xf32>
    %c0_11 = arith.constant 0 : index
    %c0_12 = arith.constant 0 : index
    %12 = vector.load %arg6[%c0_11, %c0_12] : memref<1x128xf32, #tpu.memory_space<vmem>>, vector<1x128xf32>
    %13 = vector.broadcast %12 : vector<1x128xf32> to vector<8x128xf32>
    %14 = arith.addf %11, %13 : vector<8x128xf32>
    %15 = vector.extract_strided_slice %14 {offsets = [0, 0], sizes = [8, 32], strides = [1, 1]} : vector<8x128xf32> to vector<8x32xf32>
    %16 = vector.extract_strided_slice %14 {offsets = [0, 32], sizes = [8, 32], strides = [1, 1]} : vector<8x128xf32> to vector<8x32xf32>
    %17 = arith.subf %15, %1 : vector<8x32xf32>
    %18 = arith.mulf %17, %17 : vector<8x32xf32>
    %cst_13 = arith.constant 0.000000e+00 : f32
    %19 = vector.broadcast %cst_13 : f32 to vector<8x32xf32>
    %20 = arith.subf %19, %18 : vector<8x32xf32>
    %cst_14 = arith.constant 5.000000e-01 : f32
    %21 = vector.broadcast %cst_14 : f32 to vector<8x32xf32>
    %22 = arith.mulf %20, %21 : vector<8x32xf32>
    %cst_15 = arith.constant 0.000000e+00 : f32
    %23 = vector.broadcast %cst_15 : f32 to vector<8x32xf32>
    %24 = arith.subf %23, %16 : vector<8x32xf32>
    %25 = math.exp %24 : vector<8x32xf32>
    %26 = arith.mulf %22, %25 : vector<8x32xf32>
    %cst_16 = arith.constant dense<0.000000e+00> : vector<8xf32>
    %27 = vector.multi_reduction <add>, %26, %cst_16 [1] : vector<8x32xf32> to vector<8xf32>
    %28 = vector.shape_cast %27 : vector<8xf32> to vector<8x1xf32>
    %c0_17 = arith.constant 0 : index
    %c0_18 = arith.constant 0 : index
    %29 = vector.load %arg8[%c0_17, %c0_18] : memref<8x1xf32, #tpu.memory_space<vmem>>, vector<8x1xf32>
    tpu.vector_store %arg8[%c0_17, %c0_18], %28 {strides = array<i32>} : memref<8x1xf32, #tpu.memory_space<vmem>>, vector<8x1xf32>,
    %30 = tpu.iota {dimensions = array<i32: 1>} : vector<8x128xi32>
    %c0_i32 = arith.constant 0 : i32
    %31 = vector.broadcast %c0_i32 : i32 to vector<8x128xi32>
    %32 = arith.addi %30, %31 : vector<8x128xi32>
    %c64_i32 = arith.constant 64 : i32
    %33 = vector.broadcast %c64_i32 : i32 to vector<8x128xi32>
    %34 = arith.cmpi sge, %32, %33 : vector<8x128xi32>
    %c72_i32 = arith.constant 72 : i32
    %35 = vector.broadcast %c72_i32 : i32 to vector<8x128xi32>
    %36 = arith.cmpi slt, %32, %35 : vector<8x128xi32>
    %37 = arith.andi %34, %36 : vector<8x128xi1>
    %38 = math.tanh %14 : vector<8x128xf32>
    %39 = arith.select %37, %38, %14 : vector<8x128xi1>, vector<8x128xf32>
    %c0_19 = arith.constant 0 : index
    %c0_20 = arith.constant 0 : index
    %40 = vector.load %arg7[%c0_19, %c0_20] : memref<8x128xf32, #tpu.memory_space<vmem>>, vector<8x128xf32>
    tpu.vector_store %arg7[%c0_19, %c0_20], %39 {strides = array<i32>} : memref<8x128xf32, #tpu.memory_space<vmem>>, vector<8x128xf32>,
    return
  }
  func.func @transform_0(%arg0: i32) -> (i32, i32) {
    %c0_i32 = arith.constant 0 : i32
    %c0_i32_0 = arith.constant 0 : i32
    return %arg0, %c0_i32 : i32, i32
  }
  func.func @transform_1(%arg0: i32) -> (i32, i32) {
    %c0_i32 = arith.constant 0 : i32
    %c0_i32_0 = arith.constant 0 : i32
    return %arg0, %c0_i32 : i32, i32
  }
  func.func @transform_2(%arg0: i32) -> (i32, i32) {
    %c0_i32 = arith.constant 0 : i32
    %c0_i32_0 = arith.constant 0 : i32
    %c0_i32_1 = arith.constant 0 : i32
    return %c0_i32, %c0_i32_0 : i32, i32
  }
  func.func @transform_3(%arg0: i32) -> (i32, i32) {
    %c0_i32 = arith.constant 0 : i32
    %c0_i32_0 = arith.constant 0 : i32
    %c0_i32_1 = arith.constant 0 : i32
    return %c0_i32, %c0_i32_0 : i32, i32
  }
  func.func @transform_4(%arg0: i32) -> (i32, i32) {
    %c0_i32 = arith.constant 0 : i32
    %c0_i32_0 = arith.constant 0 : i32
    %c0_i32_1 = arith.constant 0 : i32
    return %c0_i32, %c0_i32_0 : i32, i32
  }
  func.func @transform_5(%arg0: i32) -> (i32, i32) {
    %c0_i32 = arith.constant 0 : i32
    %c0_i32_0 = arith.constant 0 : i32
    %c0_i32_1 = arith.constant 0 : i32
    return %c0_i32, %c0_i32_0 : i32, i32
  }
  func.func @transform_6(%arg0: i32) -> (i32, i32) {
    %c0_i32 = arith.constant 0 : i32
    %c0_i32_0 = arith.constant 0 : i32
    return %arg0, %c0_i32 : i32, i32
  }
  func.func @transform_7(%arg0: i32) -> (i32, i32) {
    %c0_i32 = arith.constant 0 : i32
    %c0_i32_0 = arith.constant 0 : i32
    return %arg0, %c0_i32 : i32, i32
  }
}

</mosaic_0001>

<bundles_post_ra>
// kernel: tpu_custom_call.1
= control target key start
LH: loop header
LB: loop body
LE: loop exit
PB: predicated region body
PF: predicated region fallthrough
CT: control target
= control target key end

     0   :  { %13 = vsyncpa [#allocation3], 0  ;;  %s655_s0 = inlined_call_operand.hbm [shape: f32[8,32], index: 0, kind: input, shape index: {}]   ;;  %s656_s1 = inlined_call_operand.hbm [shape: f32[8,32], index: 1, kind: input, shape index: {}]   ;;  %s657_s2 = inlined_call_operand.hbm [shape: f32[32,64], index: 2, kind: input, shape index: {}]   ;;  %s658_s3 = inlined_call_operand.vmem [shape: f32[1,64], index: 3, kind: input, shape index: {}]   ;;  %s659_s4 = inlined_call_operand.hbm [shape: f32[96,128], index: 4, kind: input, shape index: {}]   ;;  %s660_s5 = inlined_call_operand.vmem [shape: f32[1,128], index: 5, kind: input, shape index: {}]   ;;  %s661_s6 = inlined_call_operand.hbm [shape: f32[8,128], index: 6, kind: output, shape index: {0}]   ;;  %s662_s7 = inlined_call_operand.vmem [shape: f32[8,1], index: 7, kind: output, shape index: {1}]  }
   0x1   :  { %14 = vsyncpa [#allocation6], 0 }
   0x2   :  { %15 = vsyncpa [#allocation9], 0 }
   0x3   :  { %16 = vsyncpa [#allocation4], 0  ;;  %s528_s24 = smov [#allocation5]   ;;  %s529_s26 = smov [#allocation2]  }
   0x4   :  { %s33_s25 = sshll.u32 %s528_s24, 4  ;;  %s23_s27 = sshll.u32 %s529_s26, 4  ;;  %s34_s25 = int_to_ptr.vmem [resolvable:$true] %s33_s25  ;;  %s24_s27 = int_to_ptr.vmem [resolvable:$true] %s23_s27 }
   0x5   :  { %s410_s30 = scalar_lea.hbm %s656_s1, 128 }
   0x6   :  { %p411_p0 = scmp.ne.s32.totalorder %s656_s1, %s410_s30  ;;  %p414_p1 = scmp.lt.u32.totalorder %s410_s30, %s656_s1 }
   0x8   :  { %p416_p2 = pnand %p414_p1, %p411_p0 }
   0xa   :  { %419 = shalt.err (!%p416_p2)
}
   0xb   :  { %s420_s12 = scalar_lea.vmem %s34_s25, 128  ;;  %p425_p4 = scmp.lt.s32.totalorder %s34_s25, %s34_s25 }
   0xc   :  { %p421_p3 = scmp.ne.s32.totalorder %s34_s25, %s420_s12  ;;  %p426_p5 = scmp.lt.s32.totalorder %s420_s12, %s420_s12 }
   0xe   :  { %p427_p6 = por %p426_p5, %p425_p4 }
  0x10   :  { %p428_p7 = pnand %p427_p6, %p421_p3 }
  0x12   :  { %431 = shalt.err (!%p428_p7)
}
  0x13   :  { %36 = dma.hbm_to_vmem [thread:$0]  %s656_s1, 128, %s34_s25, [#allocation6]  }
  0x14   :  { %s432_s17 = scalar_lea.hbm %s655_s0, 128 }
  0x15   :  { %p433_p8 = scmp.ne.s32.totalorder %s655_s0, %s432_s17  ;;  %p436_p9 = scmp.lt.u32.totalorder %s432_s17, %s655_s0 }
  0x17   :  { %p438_p10 = pnand %p436_p9, %p433_p8 }
  0x19   :  { %441 = shalt.err (!%p438_p10)
}
  0x1a   :  { %s442_s22 = scalar_lea.vmem %s24_s27, 128  ;;  %p447_p12 = scmp.lt.s32.totalorder %s24_s27, %s24_s27 }
  0x1b   :  { %p443_p11 = scmp.ne.s32.totalorder %s24_s27, %s442_s22  ;;  %p448_p13 = scmp.lt.s32.totalorder %s442_s22, %s442_s22 }
  0x1d   :  { %p449_p0 = por %p448_p13, %p447_p12 }
  0x1f   :  { %p450_p1 = pnand %p449_p0, %p443_p11 }
  0x21   :  { %453 = shalt.err (!%p450_p1)
}
  0x22   :  { %26 = dma.hbm_to_vmem [thread:$0]  %s655_s0, 128, %s24_s27, [#allocation3]  }
  0x23   :  { %s530_s24 = smov [#allocation7]   ;;  %s454_s29 = scalar_lea.hbm %s657_s2, 512 }
  0x24   :  { %s42_s25 = sshll.u32 %s530_s24, 4  ;;  %p455_p2 = scmp.ne.s32.totalorder %s657_s2, %s454_s29  ;;  %s43_s25 = int_to_ptr.vmem [resolvable:$true] %s42_s25 }
  0x25   :  { %p458_p3 = scmp.lt.u32.totalorder %s454_s29, %s657_s2 }
  0x27   :  { %p460_p4 = pnand %p458_p3, %p455_p2 }
  0x29   :  { %463 = shalt.err (!%p460_p4)
}
  0x2a   :  { %s464_s11 = scalar_lea.vmem %s43_s25, 512  ;;  %p469_p6 = scmp.lt.s32.totalorder %s43_s25, %s43_s25 }
  0x2b   :  { %p465_p5 = scmp.ne.s32.totalorder %s43_s25, %s464_s11  ;;  %p470_p7 = scmp.lt.s32.totalorder %s464_s11, %s464_s11 }
  0x2d   :  { %p471_p8 = por %p470_p7, %p469_p6 }
  0x2f   :  { %p472_p9 = pnand %p471_p8, %p465_p5 }
  0x31   :  { %475 = shalt.err (!%p472_p9)
}
  0x32   :  { %s531_s0 = smov 128   ;;  %s532_s27 = smov 8  }
  0x33   :  { %48 = dma.hbm_to_vmem [thread:$0]  %s657_s2, 512, %s43_s25, [#allocation6], %s531_s0, %s531_s0, %s532_s27  }
  0x34   :  { %s533_s14 = smov [#allocation8]   ;;  %s476_s18 = scalar_lea.hbm %s659_s4, 1536 }
  0x35   :  { %s56_s15 = sshll.u32 %s533_s14, 4  ;;  %p477_p10 = scmp.ne.s32.totalorder %s659_s4, %s476_s18  ;;  %s57_s15 = int_to_ptr.vmem [resolvable:$true] %s56_s15 }
  0x36   :  { %p480_p11 = scmp.lt.u32.totalorder %s476_s18, %s659_s4 }
  0x38   :  { %p482_p12 = pnand %p480_p11, %p477_p10 }
  0x3a   :  { %485 = shalt.err (!%p482_p12)
}
  0x3b   :  { %s486_s1 = scalar_lea.vmem %s57_s15, 1536  ;;  %p491_p0 = scmp.lt.s32.totalorder %s57_s15, %s57_s15 }
  0x3c   :  { %p487_p13 = scmp.ne.s32.totalorder %s57_s15, %s486_s1  ;;  %p492_p1 = scmp.lt.s32.totalorder %s486_s1, %s486_s1 }
  0x3e   :  { %p493_p2 = por %p492_p1, %p491_p0 }
  0x40   :  { %p494_p3 = pnand %p493_p2, %p487_p13 }
  0x42   :  { %497 = shalt.err (!%p494_p3)
}
  0x43   :  { %62 = dma.hbm_to_vmem [thread:$0]  %s659_s4, 1536, %s57_s15, [#allocation9], %s531_s0, %s531_s0, %s532_s27  }
  0x44   :  { %520 = dma.done.wait [#allocation3], 128  }
  0x45   :  { %521 = vsyncadd [#allocation3], 4294967168 }
  0x46   :  { %522 = dma.done.wait [#allocation6], 640  }
  0x47   :  { %523 = vsyncadd [#allocation6], 4294966656 }
  0x48   :  { %524 = dma.done.wait [#allocation9], 1536  }
  0x49   :  { %525 = vsyncadd [#allocation9], 4294965760  ;;  %v534_v0 = vmov 0.0|0.0   ;;  %vm535_vm0 = vmmov 0   ;;  %v536_v1 = vmov 0.0   ;;  %v79_v2 = vld [vmem:[#allocation7] sm:$0xff]  ;;  %v281_v37 = vlaneseq }
  0x4a   :  { %370 = vmatprep.subr.bf16.mxu0 %v534_v0  ;;  %340 = vmatprep.mubr.msk.f32.mxu0 %vm535_vm0, %v536_v1  ;;  %v80_v3 = vld [vmem:[#allocation7 + $0x8] sm:$0xff]  ;;  %v81_v4 = vld [vmem:[#allocation7 + $0x10] sm:$0xff]  ;;  %v82_v6 = vld [vmem:[#allocation7 + $0x18] sm:$0xff]  ;;  %s537_s4 = smov 64   ;;  %vm90_vm1 = vcmask 261120   ;;  %vm169_vm2 = vcmask 523264  }
  0x4b   :  { %376 = vmatprep.subr.bf16.mxu1 %v534_v0  ;;  %367 = vmatprep.mubr.msk.f32.mxu1 %vm535_vm0, %v536_v1  ;;  %v371_v5 = vpack.c.bf16 %v80_v3, %v79_v2  ;;  %v628_v7 = vld [vmem:[#allocation5] sm:$0xff]  ;;  %v171_v8 = vld [vmem:[#allocation8] sm:$0xff]  ;;  %v172_v9 = vld [vmem:[#allocation8 + $0x8] sm:$0xff]  ;;  %v374_v11 = vpack.c.bf16 %v82_v6, %v81_v4  ;;  %vm190_vm3 = vcmask 785408   ;;  %v282_v41 = vand.u32 127, %v281_v37 }
  0x4c   :  { %166 = vrot.lane.b32.xlu0 %v628_v7, %s537_s4  ;;  %v173_v10 = vld [vmem:[#allocation8 + $0x10] sm:$0xff]  ;;  %v377_v12 = vpack.c.bf16 %v172_v9, %v171_v8  ;;  %v174_v13 = vld [vmem:[#allocation8 + $0x18] sm:$0xff]  ;;  %v175_v15 = vld [vmem:[#allocation8 + $0x20] sm:$0xff] }
  0x4d   :  { %372 = vmatpush3.bf16.msra.mxu0 %v371_v5  ;;  %v380_v14 = vpack.c.bf16 %v174_v13, %v173_v10  ;;  %v176_v16 = vld [vmem:[#allocation8 + $0x28] sm:$0xff]  ;;  %v77_v17 = vld [vmem:[#allocation2] sm:$0xff]  ;;  %v178_v20 = vld [vmem:[#allocation8 + $0x38] sm:$0xff]  ;;  %vm283_vm4 = vcmp.ge.s32.totalorder %v282_v41, 64  ;;  %vm284_vm5 = vcmp.lt.s32.totalorder %v282_v41, 72 }
  0x4e   :  { %373 = vmatprep.subr.bf16.mxu0 %v534_v0  ;;  %378 = vmatpush3.bf16.msra.mxu1 %v377_v12  ;;  %v383_v18 = vpack.c.bf16 %v176_v16, %v175_v15  ;;  %v177_v19 = vld [vmem:[#allocation8 + $0x30] sm:$0xff]  ;;  %v179_v22 = vld [vmem:[#allocation8 + $0x40] sm:$0xff]  ;;  %v180_v23 = vld [vmem:[#allocation8 + $0x48] sm:$0xff] }
  0x4f   :  { %379 = vmatprep.subr.bf16.mxu1 %v534_v0  ;;  %v386_v21 = vpack.c.bf16 %v178_v20, %v177_v19  ;;  %v389_v24 = vpack.c.bf16 %v180_v23, %v179_v22  ;;  %v181_v25 = vld [vmem:[#allocation8 + $0x50] sm:$0xff]  ;;  %v182_v26 = vld [vmem:[#allocation8 + $0x58] sm:$0xff]  ;;  %vm285_vm6 = vmand %vm283_vm4, %vm284_vm5 }
  0x50   :  { %v392_v27 = vpack.c.bf16 %v182_v26, %v181_v25  ;;  %v310_v28 = vld [vmem:[%s658_s3] ss:$0 sm:$0xff]  ;;  %s538_s3 = smov 96  }
  0x51   :  { %375 = vmatpush3.bf16.msra.mxu0 %v374_v11  ;;  %v312_v35 = vld [vmem:[%s660_s5] ss:$0 sm:$0xff]  ;;  %s539_s5 = smov [#allocation10]  }
  0x52   :  { %381 = vmatpush3.bf16.msra.mxu1 %v380_v14  ;;  %s295_s29 = sshll.u32 %s539_s5, 4  ;;  %s296_s29 = int_to_ptr.vmem [resolvable:$true] %s295_s29 }
  0x53   :  { %382 = vmatprep.subr.bf16.mxu1 %v534_v0  ;;  %s498_s30 = scalar_lea.vmem %s296_s29, 128  ;;  %p503_p5 = scmp.lt.s32.totalorder %s296_s29, %s296_s29 }
  0x54   :  { %341 = vmatmul.mubr.msk.f32.vlgmr.msra.gmra.mrb[0].mxu0 %vm90_vm1, %v77_v17  ;;  %p499_p4 = scmp.ne.s32.totalorder %s296_s29, %s498_s30  ;;  %p504_p6 = scmp.lt.s32.totalorder %s498_s30, %s498_s30 }
  0x56   :  { %384 = vmatpush3.bf16.msra.mxu1 %v383_v18  ;;  %p505_p7 = por %p504_p6, %p503_p5 }
  0x57   :  { %385 = vmatprep.subr.bf16.mxu1 %v534_v0 }
  0x58   :  { %p506_p8 = pnand %p505_p7, %p499_p4 }
  0x5a   :  { %387 = vmatpush3.bf16.msra.mxu1 %v386_v21 }
  0x5b   :  { %388 = vmatprep.subr.bf16.mxu1 %v534_v0 }
  0x5e   :  { %390 = vmatpush3.bf16.msra.mxu1 %v389_v24 }
  0x5f   :  { %391 = vmatprep.subr.bf16.mxu1 %v534_v0 }
  0x62   :  { %393 = vmatpush3.bf16.msra.mxu1 %v392_v27 }
  0xbe   :  { %v167_v32 = vpop.permute.xlu0 %166 }
 0x127   :  { %v160_v29 = vpop.f32.mrb[0].mxu0 }
 0x128   :  { %v161_v30 = vadd.f32 %v310_v28, %v160_v29  ;;  %v342_v31 = vpop.f32.mrb[1].mxu0 }
 0x12a   :  { %v164_v33 = vmax.f32 %v161_v30, 0.0 }
 0x12c   :  { %v170_v34 = vsel %vm169_vm2, %v164_v33, %v167_v32 }
 0x12d   :  { %368 = vmatmul.mubr.msk.f32.vlgmr.msra.gmra.mrb[0].mxu1 %vm190_vm3, %v170_v34 }
 0x200   :  { %v260_v36 = vpop.f32.mrb[0].mxu1 }
 0x201   :  { %v261_v38 = vadd.f32 %v312_v35, %v260_v36  ;;  %v369_v39 = vpop.f32.mrb[1].mxu1 }
 0x203   :  { %v268_v40 = vsub.f32 0.0, %v261_v38  ;;  %406 = vtanh.f32 %v261_v38  ;;  %v264_v46 = vsub.f32 %v261_v38, %v628_v7 }
 0x205   :  { %v269_v42 = vmul.f32 1.442695, %v268_v40  ;;  %v265_v47 = vmul.f32 %v264_v46, %v264_v46 }
 0x207   :  { %408 = vpow2.f32 %v269_v42  ;;  %v266_v48 = vsub.f32 0.0, %v265_v47 }
 0x209   :  { %v267_v49 = vmul.f32 0.5, %v266_v48 }
 0x20d   :  { %v407_v43 = vpop.eup %406 }
 0x20e   :  { %v287_v44 = vsel %vm285_vm6, %v407_v43, %v261_v38 }
 0x20f   :  { %288 = vst [vmem:[#allocation10] sm:$0xff] %v287_v44 }
 0x211   :  { %v409_v45 = vpop.eup %408 }
 0x212   :  { %272 = vrot.lane.b32.xlu0 %v409_v45, %s538_s3 }
 0x284   :  { %v273_v50 = vpop.permute.xlu0 %272 }
 0x285   :  { %v275_v51 = vmul.f32 %v273_v50, %v267_v49 }
 0x287   :  { %v276_v52 = vsel %vm90_vm1, %v275_v51, 0.0 }
 0x288   :  { %277 = vadd.xlane.f32.xlu1 %v276_v52 }
 0x289   :  { %509 = shalt.err (!%p506_p8)
}
 0x28a   :  { %s510_s10 = scalar_lea.hbm %s661_s6, 128 }
 0x28b   :  { %p511_p9 = scmp.ne.s32.totalorder %s661_s6, %s510_s10  ;;  %p514_p10 = scmp.lt.u32.totalorder %s510_s10, %s661_s6 }
 0x28d   :  { %p516_p11 = pnand %p514_p10, %p511_p9 }
 0x28f   :  { %519 = shalt.err (!%p516_p11)
}
 0x290   :  { %298 = dma.vmem_to_hbm [thread:$0]  %s296_s29, 128, %s661_s6, [#allocation4]   ;;  %vm279_vm7 = vcmask 7168  }
 0x315   :  { %v278_v53 = vpop.xlane.xlu1 %277 }
 0x316   :  { %280 = vst.msk [vmem:[%s662_s7] sm:$0xff] %vm279_vm7, %v278_v53 }
 0x317   :  { %526 = dma.done.wait [#allocation4], 128  }
 0x318   :  { %527 = vsyncadd [#allocation4], 4294967168 }
 0x319   :  { %306 = vsyncpa [#allocation3], 1 }
 0x31a   :  { %307 = vsyncpa [#allocation6], 1 }
 0x31b   :  { %308 = vsyncpa [#allocation9], 1 }
 0x31c   :  { %309 = vsyncpa [#allocation4], 1 }

</bundles_post_ra>
